<compile_context>
chip_gen: v7x
topology: tpu7x:2x2x1
jax: 0.10.0
libtpu: 0.0.40
codegen_flags: <defaults>
</compile_context>

<pallas_src>
import functools
import itertools

import numpy as np
import jax
import jax.numpy as jnp
from jax.experimental import pallas as pl
from jax.experimental.pallas import tpu as pltpu

# ---- static configuration (mirrors MultiDomainLoss.__init__ / x-umx) ----------------
B, S, M = 2, 4, 2               # batch, n_sources, n_mics
N_FFT, HOP = 16, 8
N_BINS = N_FFT // 2 + 1         # 9
F = 8                           # n_frames
T = HOP * (F - 1)               # istft(center=True) output length = 56
T_PAD = T + N_FFT               # reflect-padded stft input length = 72
L_PAD = N_FFT + HOP * (F - 1)   # overlap-add buffer length = 72
R = B * S * M                   # 16 spectrogram rows
FK = F * N_BINS                 # 72 flattened (bin-major) spectrum size
assert T + FK == 128            # makes the fused loss stage exactly one vreg wide
WEIGHT_TIME = 10.0
WEIGHT_FREQ = 1.0
MIN_PAIR, MAX_PAIR = 1, 3       # CombinationLoss over source_dim=1

_COMBOS = tuple(
    idx for p in range(MIN_PAIR, MAX_PAIR + 1)
    for idx in itertools.combinations(range(S), p)
)
N_COMB = len(_COMBOS)           # 14 for S=4, pairs 1..3
NCM = B * N_COMB * M            # 56 combination-loss rows


# ---- deterministic constants / folded matrices (built once, in float64) -------------
def build_constants():
    n = np.arange(N_FFT, dtype=np.float64)[:, None]
    k = np.arange(N_BINS, dtype=np.float64)[None, :]
    ang = 2.0 * np.pi * n * k / N_FFT
    scale = np.where((k == 0) | (k == N_FFT // 2), 1.0, 2.0) / N_FFT
    cmat = np.cos(ang) * scale        # (N_FFT, N_BINS): onesided irfft real-part weights
    smat = -np.sin(ang) * scale       # (N_FFT, N_BINS): onesided irfft imag-part weights
    dcos = np.cos(ang)                # (N_FFT, N_BINS): rfft real part
    dsin = -np.sin(ang)               # (N_FFT, N_BINS): rfft imag part

    i = np.arange(N_FFT, dtype=np.float64)
    window = 0.5 - 0.5 * np.cos(2.0 * np.pi * i / N_FFT)   # periodic Hann (torch default)

    # OLA window^2 normalization envelope, center-trimmed
    ola_w2 = np.zeros(L_PAD, np.float64)
    for t in range(F):
        ola_w2[t * HOP:t * HOP + N_FFT] += window ** 2
    inv_env = 1.0 / ola_w2[N_FFT // 2:N_FFT // 2 + T]

    # Folded iSTFT, BIN-MAJOR rows (row = k*F + t):  y = [re | im] @ vstack([A_re, A_im])
    A_re = np.zeros((FK, T), np.float64)
    A_im = np.zeros((FK, T), np.float64)
    for t in range(F):
        rows = np.arange(N_BINS) * F + t
        for j in range(N_FFT):
            l = t * HOP + j - N_FFT // 2
            if 0 <= l < T:
                A_re[rows, l] += cmat[j] * window[j] * inv_env[l]
                A_im[rows, l] += smat[j] * window[j] * inv_env[l]

    # Folded STFT (center=True reflect pad folded), BIN-MAJOR cols:
    #   [re | im] = x @ hstack([D_re, D_im])
    D_re = np.zeros((T, FK), np.float64)
    D_im = np.zeros((T, FK), np.float64)
    for p in range(T_PAD):
        if p < N_FFT // 2:
            l = N_FFT // 2 - p                       # left reflect
        elif p < N_FFT // 2 + T:
            l = p - N_FFT // 2                       # interior
        else:
            l = T - 2 - (p - N_FFT // 2 - T)         # right reflect
        for t in range(F):
            j = p - t * HOP
            if 0 <= j < N_FFT:
                cols = np.arange(N_BINS) * F + t
                D_re[l, cols] += window[j] * dcos[j]
                D_im[l, cols] += window[j] * dsin[j]

    AB = np.vstack([A_re, A_im])      # (2*FK, T)   single fused iSTFT matrix
    Dcat = np.hstack([D_re, D_im])    # (T, 2*FK)   single fused STFT matrix

    # Source-sum + broadcast matrix: mix_row[r] = sum over rows with same (batch, mic)
    bsum = np.zeros((R, R), np.float64)
    for b in range(B):
        for s in range(S):
            for m in range(M):
                r = b * S * M + s * M + m
                for s2 in range(S):
                    bsum[r, b * S * M + s2 * M + m] = 1.0

    # CombinationLoss mask, block-diagonal over batch and expanded over mics
    cmask = np.zeros((NCM, R), np.float64)
    for b in range(B):
        for c, idx in enumerate(_COMBOS):
            for m in range(M):
                row = (b * N_COMB + c) * M + m
                for s in idx:
                    cmask[row, b * S * M + s * M + m] = 1.0

    # (8, NCM) selector: rows 0..B-1 = per-batch sums, rows B..7 = batch mean (1/B)
    bsel8 = np.zeros((8, NCM), np.float64)
    for b in range(B):
        bsel8[b, b * N_COMB * M:(b + 1) * N_COMB * M] = 1.0
    bsel8[B:, :] = 1.0 / B

    f32 = lambda a: jnp.asarray(a, jnp.float32)
    return dict(AB=f32(AB), Dcat=f32(Dcat), bsum=f32(bsum),
                cmask=f32(cmask), bsel8=f32(bsel8), window1d=f32(window))


# ---- single fused Pallas kernel (no grid, everything VMEM-resident) ------------------
def _fused_loss_kernel(amp_ref, tcat_ref, ab_ref, dcat_ref,
                       bsum_ref, cmask_ref, bsel8_ref, o_ref, *, swt, swf):
    f32 = jnp.float32
    amp = amp_ref[...]           # (R, FK)      nonnegative input amplitude, bin-major
    tcat = tcat_ref[...]         # (R, 2*FK)    [target_re | target_im]
    ab = ab_ref[...]             # (2*FK, T)    fused iSTFT matrix

    # target_time = istft(target)           — fused re/im matmul
    tgt_time = jnp.dot(tcat, ab, preferred_element_type=f32)                 # (R, T)

    # mixture_time = target_time.sum(sources), broadcast back to every (b,s,m) row
    mix_time = jnp.dot(bsum_ref[...], tgt_time, preferred_element_type=f32)  # (R, T)

    # mixture = stft(mixture_time)          — fused re/im matmul: [mre | mim]
    mcat = jnp.dot(mix_time, dcat_ref[...], preferred_element_type=f32)      # (R, 2*FK)

    # input = input_amplitude * exp(1j * angle(mixture)); angle(0) = 0 -> (cos,sin)=(1,0)
    mre = mcat[:, :FK]
    mim = mcat[:, FK:]
    mag_sq = mre * mre + mim * mim
    safe = mag_sq > 1e-30                       # epsilon floor (rsqrt of denormal -> inf)
    inv = jax.lax.rsqrt(jnp.where(safe, mag_sq, 1.0))
    cosp = jnp.where(safe, mre * inv, 1.0)
    sinp = jnp.where(safe, mim * inv, 0.0)
    in_cat = jnp.concatenate([amp * cosp, amp * sinp], axis=1)               # (R, 2*FK)

    # input_time - target_time = (in_cat - tcat) @ AB   (subtraction fused by linearity)
    dt = jnp.dot(in_cat - tcat, ab, preferred_element_type=f32)              # (R, T)

    # frequency residual: input_amplitude - |target|
    tsq = tcat * tcat
    tamp = jnp.sqrt(tsq[:, :FK] + tsq[:, FK:])                               # (R, FK)

    # lane-dense 128-wide residual: sqrt-weights folded into the columns
    diff = jnp.concatenate([dt * swt, (amp - tamp) * swf], axis=1)           # (R, 128)

    # CombinationLoss (both domains) in one mask matmul, per-batch + batch-mean in one
    p = jnp.dot(cmask_ref[...], diff, preferred_element_type=f32)            # (NCM, 128)
    lb8 = jnp.dot(bsel8_ref[...], p * p, preferred_element_type=f32)         # (8, 128)
    o_ref[...] = jnp.broadcast_to(jnp.sum(lb8, axis=1, keepdims=True), (8, 128))


# ---- MultiDomainLoss.forward ---------------------------------------------------------
def multi_domain_loss(input_amp, target_re, target_im, consts,
                      weight_time=WEIGHT_TIME, weight_frequency=WEIGHT_FREQ,
                      batch_mean=True):
    # inputs: (B, S, M, n_bins, n_frames); bin-major constants -> plain reshape, no transpose
    amp = input_amp.astype(jnp.float32).reshape(R, FK)
    tre = target_re.astype(jnp.float32).reshape(R, FK)
    tim = target_im.astype(jnp.float32).reshape(R, FK)
    tcat = jnp.concatenate([tre, tim], axis=1)                   # (R, 2*FK)

    # sqrt of per-domain normalized weights, folded into the residual columns
    swt = float(np.sqrt(float(weight_time) / (N_COMB * M * T)))
    swf = float(np.sqrt(float(weight_frequency) / (N_COMB * M * F * N_BINS)))

    vmem = pl.BlockSpec(memory_space=pltpu.MemorySpace.VMEM)     # whole array, no grid
    out = pl.pallas_call(
        functools.partial(_fused_loss_kernel, swt=swt, swf=swf),
        out_shape=jax.ShapeDtypeStruct((8, 128), jnp.float32),
        in_specs=[vmem] * 7,
        out_specs=vmem,
    )(amp, tcat,
      consts["AB"], consts["Dcat"], consts["bsum"], consts["cmask"], consts["bsel8"])

    if batch_mean:
        return out[B, 0]            # rows >= B hold the batch-mean loss
    # TODO(synk): per_domain=True path raises NotImplementedError in the reference; not implemented.
    return out[:B, 0]               # per-batch weighted loss


# ---- pure-JAX reference (for self-check only) ----------------------------------------
def _ref_istft(spec, window):
    spec = jnp.swapaxes(spec, -1, -2)                             # (..., F, K)
    frames = jnp.fft.irfft(spec, n=N_FFT, axis=-1) * window       # (..., F, N_FFT)
    buf = jnp.zeros(frames.shape[:-2] + (L_PAD,), jnp.float32)
    wsq = jnp.zeros((L_PAD,), jnp.float32)
    for t in range(F):
        buf = buf.at[..., t * HOP:t * HOP + N_FFT].add(frames[..., t, :])
        wsq = wsq.at[t * HOP:t * HOP + N_FFT].add(window ** 2)
    return buf[..., N_FFT // 2:N_FFT // 2 + T] / wsq[N_FFT // 2:N_FFT // 2 + T]


def _ref_stft(x, window):
    pads = [(0, 0)] * (x.ndim - 1) + [(N_FFT // 2, N_FFT // 2)]
    xpad = jnp.pad(x, pads, mode="reflect")
    frames = jnp.stack([xpad[..., t * HOP:t * HOP + N_FFT] for t in range(F)], axis=-2)
    spec = jnp.fft.rfft(frames * window, n=N_FFT, axis=-1)        # (..., F, K)
    return jnp.swapaxes(spec, -1, -2)


def _ref_comb_mse(x, y):
    losses = []
    for idx in _COMBOS:
        xi = x[:, list(idx)].sum(axis=1)
        yi = y[:, list(idx)].sum(axis=1)
        losses.append(jnp.mean((xi - yi) ** 2, axis=tuple(range(1, xi.ndim))))
    return jnp.mean(jnp.stack(losses, 0), axis=0)                 # (B,)


def multi_domain_loss_ref(input_amp, target_re, target_im, window):
    target = target_re + 1j * target_im
    tamp = jnp.abs(target)
    t_time = _ref_istft(target, window)
    mix_time = t_time.sum(axis=1, keepdims=True)
    mix = _ref_stft(mix_time, window)
    inp = input_amp * jnp.exp(1j * jnp.angle(mix))
    in_time = _ref_istft(inp, window)
    loss = (WEIGHT_TIME * _ref_comb_mse(in_time, t_time)
            + WEIGHT_FREQ * _ref_comb_mse(input_amp, tamp))
    return jnp.mean(loss)


# ---- main ------------------------------------------------------------------------------
if __name__ == "__main__":
    key = jax.random.PRNGKey(0)
    k1, k2, k3 = jax.random.split(key, 3)
    input_amp = jnp.abs(jax.random.normal(k1, (B, S, M, N_BINS, F), dtype=jnp.float32))
    target_re = jax.random.normal(k2, (B, S, M, N_BINS, F), dtype=jnp.float32)
    target_im = jax.random.normal(k3, (B, S, M, N_BINS, F), dtype=jnp.float32)

    consts = build_constants()

    loss = jax.jit(multi_domain_loss)(input_amp, target_re, target_im, consts)
    loss = jax.block_until_ready(loss)

    ref = jax.block_until_ready(
        multi_domain_loss_ref(input_amp, target_re, target_im, consts["window1d"]))

    assert bool(jnp.isfinite(loss)), f"non-finite loss: {loss}"
    if not np.allclose(np.asarray(loss), np.asarray(ref), rtol=1e-2, atol=1e-3):
        raise AssertionError(f"Pallas/ref mismatch: pallas={float(loss)} ref={float(ref)}")
    print("KERNEL_OK")
</pallas_src>

<mosaic_0001>
module attributes {stable_mosaic.version = 11 : i64} {
  func.func @_fused_loss_kernel(%arg0: memref<16x72xf32, #tpu.memory_space<vmem>>, %arg1: memref<16x144xf32, #tpu.memory_space<vmem>>, %arg2: memref<144x56xf32, #tpu.memory_space<vmem>>, %arg3: memref<56x144xf32, #tpu.memory_space<vmem>>, %arg4: memref<16x16xf32, #tpu.memory_space<vmem>>, %arg5: memref<56x16xf32, #tpu.memory_space<vmem>>, %arg6: memref<8x56xf32, #tpu.memory_space<vmem>>, %arg7: memref<8x128xf32, #tpu.memory_space<vmem>>) attributes {dimension_semantics = [], scalar_prefetch = 0 : i64, scratch_operands = 0 : i64, tpu.core_type = #tpu.core_type<tc>} {
    %c0 = arith.constant 0 : index
    %c0_0 = arith.constant 0 : index
    %0 = vector.load %arg0[%c0, %c0_0] : memref<16x72xf32, #tpu.memory_space<vmem>>, vector<16x72xf32>
    %c0_1 = arith.constant 0 : index
    %c0_2 = arith.constant 0 : index
    %1 = vector.load %arg1[%c0_1, %c0_2] : memref<16x144xf32, #tpu.memory_space<vmem>>, vector<16x144xf32>
    %c0_3 = arith.constant 0 : index
    %c0_4 = arith.constant 0 : index
    %2 = vector.load %arg2[%c0_3, %c0_4] : memref<144x56xf32, #tpu.memory_space<vmem>>, vector<144x56xf32>
    %cst = arith.constant dense<0.000000e+00> : vector<16x56xf32>
    %3 = tpu.matmul %1, %2, %cst {dimension_numbers = #tpu.dot_dimension_numbers<[1], [0], [0], [1], [0, 0, 1, 1], [], []>} : vector<16x144xf32>, vector<144x56xf32>, vector<16x56xf32> -> vector<16x56xf32>
    %c0_5 = arith.constant 0 : index
    %c0_6 = arith.constant 0 : index
    %4 = vector.load %arg4[%c0_5, %c0_6] : memref<16x16xf32, #tpu.memory_space<vmem>>, vector<16x16xf32>
    %cst_7 = arith.constant dense<0.000000e+00> : vector<16x56xf32>
    %5 = tpu.matmul %4, %3, %cst_7 {dimension_numbers = #tpu.dot_dimension_numbers<[1], [0], [0], [1], [0, 0, 1, 1], [], []>} : vector<16x16xf32>, vector<16x56xf32>, vector<16x56xf32> -> vector<16x56xf32>
    %c0_8 = arith.constant 0 : index
    %c0_9 = arith.constant 0 : index
    %6 = vector.load %arg3[%c0_8, %c0_9] : memref<56x144xf32, #tpu.memory_space<vmem>>, vector<56x144xf32>
    %cst_10 = arith.constant dense<0.000000e+00> : vector<16x144xf32>
    %7 = tpu.matmul %5, %6, %cst_10 {dimension_numbers = #tpu.dot_dimension_numbers<[1], [0], [0], [1], [0, 0, 1, 1], [], []>} : vector<16x56xf32>, vector<56x144xf32>, vector<16x144xf32> -> vector<16x144xf32>
    %8 = vector.extract_strided_slice %7 {offsets = [0, 0], sizes = [16, 72], strides = [1, 1]} : vector<16x144xf32> to vector<16x72xf32>
    %9 = vector.extract_strided_slice %7 {offsets = [0, 72], sizes = [16, 72], strides = [1, 1]} : vector<16x144xf32> to vector<16x72xf32>
    %10 = arith.mulf %8, %8 : vector<16x72xf32>
    %11 = arith.mulf %9, %9 : vector<16x72xf32>
    %12 = arith.addf %10, %11 : vector<16x72xf32>
    %cst_11 = arith.constant 1.000000e-30 : f32
    %13 = vector.broadcast %cst_11 : f32 to vector<16x72xf32>
    %14 = arith.cmpf ogt, %12, %13 : vector<16x72xf32>
    %cst_12 = arith.constant 1.000000e+00 : f32
    %15 = vector.broadcast %cst_12 : f32 to vector<16x72xf32>
    %16 = arith.select %14, %12, %15 : vector<16x72xi1>, vector<16x72xf32>
    %17 = math.rsqrt %16 : vector<16x72xf32>
    %18 = arith.mulf %8, %17 : vector<16x72xf32>
    %cst_13 = arith.constant 1.000000e+00 : f32
    %19 = vector.broadcast %cst_13 : f32 to vector<16x72xf32>
    %20 = arith.select %14, %18, %19 : vector<16x72xi1>, vector<16x72xf32>
    %21 = arith.mulf %9, %17 : vector<16x72xf32>
    %cst_14 = arith.constant 0.000000e+00 : f32
    %22 = vector.broadcast %cst_14 : f32 to vector<16x72xf32>
    %23 = arith.select %14, %21, %22 : vector<16x72xi1>, vector<16x72xf32>
    %24 = arith.mulf %0, %20 : vector<16x72xf32>
    %25 = arith.mulf %0, %23 : vector<16x72xf32>
    %26 = tpu.concatenate %24, %25 in 1 : vector<16x72xf32>, vector<16x72xf32> -> vector<16x144xf32>
    %27 = arith.subf %26, %1 : vector<16x144xf32>
    %cst_15 = arith.constant dense<0.000000e+00> : vector<16x56xf32>
    %28 = tpu.matmul %27, %2, %cst_15 {dimension_numbers = #tpu.dot_dimension_numbers<[1], [0], [0], [1], [0, 0, 1, 1], [], []>} : vector<16x144xf32>, vector<144x56xf32>, vector<16x56xf32> -> vector<16x56xf32>
    %29 = arith.mulf %1, %1 : vector<16x144xf32>
    %30 = vector.extract_strided_slice %29 {offsets = [0, 0], sizes = [16, 72], strides = [1, 1]} : vector<16x144xf32> to vector<16x72xf32>
    %31 = vector.extract_strided_slice %29 {offsets = [0, 72], sizes = [16, 72], strides = [1, 1]} : vector<16x144xf32> to vector<16x72xf32>
    %32 = arith.addf %30, %31 : vector<16x72xf32>
    %33 = math.sqrt %32 : vector<16x72xf32>
    %cst_16 = arith.constant 0.0798595697 : f32
    %34 = vector.broadcast %cst_16 : f32 to vector<16x56xf32>
    %35 = arith.mulf %28, %34 : vector<16x56xf32>
    %36 = arith.subf %0, %33 : vector<16x72xf32>
    %cst_17 = arith.constant 0.022271771 : f32
    %37 = vector.broadcast %cst_17 : f32 to vector<16x72xf32>
    %38 = arith.mulf %36, %37 : vector<16x72xf32>
    %39 = tpu.concatenate %35, %38 in 1 : vector<16x56xf32>, vector<16x72xf32> -> vector<16x128xf32>
    %c0_18 = arith.constant 0 : index
    %c0_19 = arith.constant 0 : index
    %40 = vector.load %arg5[%c0_18, %c0_19] : memref<56x16xf32, #tpu.memory_space<vmem>>, vector<56x16xf32>
    %cst_20 = arith.constant dense<0.000000e+00> : vector<56x128xf32>
    %41 = tpu.matmul %40, %39, %cst_20 {dimension_numbers = #tpu.dot_dimension_numbers<[1], [0], [0], [1], [0, 0, 1, 1], [], []>} : vector<56x16xf32>, vector<16x128xf32>, vector<56x128xf32> -> vector<56x128xf32>
    %c0_21 = arith.constant 0 : index
    %c0_22 = arith.constant 0 : index
    %42 = vector.load %arg6[%c0_21, %c0_22] : memref<8x56xf32, #tpu.memory_space<vmem>>, vector<8x56xf32>
    %43 = arith.mulf %41, %41 : vector<56x128xf32>
    %cst_23 = arith.constant dense<0.000000e+00> : vector<8x128xf32>
    %44 = tpu.matmul %42, %43, %cst_23 {dimension_numbers = #tpu.dot_dimension_numbers<[1], [0], [0], [1], [0, 0, 1, 1], [], []>} : vector<8x56xf32>, vector<56x128xf32>, vector<8x128xf32> -> vector<8x128xf32>
    %cst_24 = arith.constant dense<0.000000e+00> : vector<8xf32>
    %45 = vector.multi_reduction <add>, %44, %cst_24 [1] : vector<8x128xf32> to vector<8xf32>
    %46 = vector.shape_cast %45 : vector<8xf32> to vector<8x1xf32>
    %47 = vector.shape_cast %46 : vector<8x1xf32> to vector<8x1xf32>
    %48 = vector.broadcast %47 : vector<8x1xf32> to vector<8x128xf32>
    %c0_25 = arith.constant 0 : index
    %c0_26 = arith.constant 0 : index
    %49 = vector.load %arg7[%c0_25, %c0_26] : memref<8x128xf32, #tpu.memory_space<vmem>>, vector<8x128xf32>
    tpu.vector_store %arg7[%c0_25, %c0_26], %48 {strides = array<i32>} : memref<8x128xf32, #tpu.memory_space<vmem>>, vector<8x128xf32>,
    return
  }
}

</mosaic_0001>

<bundles_post_ra>
// kernel: multi_domain_loss.1
= control target key start
LH: loop header
LB: loop body
LE: loop exit
PB: predicated region body
PF: predicated region fallthrough
CT: control target
= control target key end

     0   :  { %v929_v0 = vmov 0.0|0.0   ;;  %vm50_vm0 = vcmask 130048   ;;  %v930_v59 = vmov 0.0   ;;  %vm229_vm1 = vcmask 457728   ;;  %s1265_s2 = inlined_call_operand.vmem [shape: f32[144,56], index: 2, kind: input, shape index: {}]   ;;  %s1266_s1 = inlined_call_operand.vmem [shape: f32[16,144], index: 1, kind: input, shape index: {}]   ;;  %s1267_s4 = inlined_call_operand.vmem [shape: f32[16,16], index: 4, kind: input, shape index: {}]   ;;  %s1268_s3 = inlined_call_operand.vmem [shape: f32[56,144], index: 3, kind: input, shape index: {}]   ;;  %s1269_s0 = inlined_call_operand.vmem [shape: f32[16,72], index: 0, kind: input, shape index: {}]   ;;  %s1270_s5 = inlined_call_operand.vmem [shape: f32[56,16], index: 5, kind: input, shape index: {}]   ;;  %s1271_s6 = inlined_call_operand.vmem [shape: f32[8,56], index: 6, kind: input, shape index: {}]   ;;  %s1272_s7 = inlined_call_operand.vmem [shape: f32[8,128], index: 7, kind: output, shape index: {}]  }
   0x1   :  { %829 = vmatprep.subr.bf16.mxu0 %v929_v0  ;;  %v32_v1 = vld [vmem:[%s1265_s2] sm:$0xff]  ;;  %v33_v2 = vld [vmem:[%s1265_s2 + $0x8] sm:$0xff]  ;;  %v34_v3 = vld [vmem:[%s1265_s2 + $0x10] sm:$0xff]  ;;  %vm387_vm4 = vcmask 588800   ;;  %vm933_vm9 = vmmov 0  }
   0x2   :  { %v984_v4 = vpack.c.bf16 %v33_v2, %v32_v1  ;;  %v35_v5 = vld [vmem:[%s1265_s2 + $0x18] sm:$0xff]  ;;  %v36_v7 = vld [vmem:[%s1265_s2 + $0x20] sm:$0xff]  ;;  %v37_v8 = vld [vmem:[%s1265_s2 + $0x28] sm:$0xff] }
   0x3   :  { %v990_v6 = vpack.c.bf16 %v35_v5, %v34_v3  ;;  %v1002_v9 = vld [vmem:[%s1266_s1 + $0x8] sm:$0xff]  ;;  %v1005_v10 = vpack.c.bf16 %v37_v8, %v36_v7  ;;  %v38_v11 = vld [vmem:[%s1265_s2 + $0x30] sm:$0xff]  ;;  %v39_v12 = vld [vmem:[%s1265_s2 + $0x38] sm:$0xff] }
   0x4   :  { %831 = vmatpush1.bf16.msra.mxu0 %v984_v4  ;;  %743 = vmatprep.mubr.msk.f32.mxu0 %vm50_vm0, %v1002_v9  ;;  %v1017_v13 = vpack.c.bf16 %v39_v12, %v38_v11  ;;  %v40_v14 = vld [vmem:[%s1265_s2 + $0x40] sm:$0xff]  ;;  %v41_v15 = vld [vmem:[%s1265_s2 + $0x48] sm:$0xff]  ;;  %v42_v17 = vld [vmem:[%s1265_s2 + $0x50] sm:$0xff] }
   0x5   :  { %832 = vmatprep.subr.bf16.mxu0 %v929_v0  ;;  %v1027_v16 = vpack.c.bf16 %v41_v15, %v40_v14  ;;  %v43_v18 = vld [vmem:[%s1265_s2 + $0x58] sm:$0xff]  ;;  %v44_v20 = vld [vmem:[%s1265_s2 + $0x60] sm:$0xff]  ;;  %v45_v21 = vld [vmem:[%s1265_s2 + $0x68] sm:$0xff] }
   0x6   :  { %v1037_v19 = vpack.c.bf16 %v43_v18, %v42_v17  ;;  %v1047_v22 = vpack.c.bf16 %v45_v21, %v44_v20  ;;  %v46_v23 = vld [vmem:[%s1265_s2 + $0x70] sm:$0xff]  ;;  %v47_v24 = vld [vmem:[%s1265_s2 + $0x78] sm:$0xff]  ;;  %v48_v26 = vld [vmem:[%s1265_s2 + $0x80] sm:$0xff] }
   0x7   :  { %v1057_v25 = vpack.c.bf16 %v47_v24, %v46_v23  ;;  %v49_v27 = vld [vmem:[%s1265_s2 + $0x88] sm:$0xff]  ;;  %v1074_v29 = vld [vmem:[%s1266_s1] sm:$0xff]  ;;  %v1079_v30 = vld [vmem:[%s1266_s1 + $0x18] sm:$0xff] }
   0x8   :  { %834 = vmatpush1.bf16.msra.mxu0 %v990_v6  ;;  %v1067_v28 = vpack.c.bf16 %v49_v27, %v48_v26  ;;  %v1088_v31 = vld [vmem:[%s1266_s1 + $0x10] sm:$0xff]  ;;  %v132_v32 = vld [vmem:[%s1267_s4] sm:$0xff]  ;;  %v216_v35 = vld [vmem:[%s1268_s3 + $0x8] sm:$0xff]  ;;  %s932_s1 = smov 72  }
   0x9   :  { %835 = vmatprep.subr.bf16.mxu0 %v929_v0  ;;  %784 = vmatprep.mubr.msk.f32.mxu1 %vm50_vm0, %v132_v32  ;;  %v218_v36 = vld [vmem:[%s1268_s3 + $0x18] sm:$0xff]  ;;  %v215_v41 = vld [vmem:[%s1268_s3] sm:$0xff]  ;;  %v217_v42 = vld [vmem:[%s1268_s3 + $0x10] sm:$0xff] }
   0xa   :  { %v860_v40 = vpack.c.bf16 %v218_v36, %v216_v35  ;;  %v220_v43 = vld [vmem:[%s1268_s3 + $0x28] sm:$0xff]  ;;  %v222_v44 = vld [vmem:[%s1268_s3 + $0x38] sm:$0xff]  ;;  %v862_v46 = vpack.c.bf16 %v217_v42, %v215_v41  ;;  %v219_v48 = vld [vmem:[%s1268_s3 + $0x20] sm:$0xff] }
   0xb   :  { %v133_v45 = vld [vmem:[%s1267_s4 + $0x8] sm:$0xff]  ;;  %v864_v47 = vpack.c.bf16 %v222_v44, %v220_v43  ;;  %v221_v49 = vld [vmem:[%s1268_s3 + $0x30] sm:$0xff]  ;;  %v226_v51 = vld [vmem:[%s1268_s3 + $0x58] sm:$0xff]  ;;  %v476_v44 = vmul.f32 %v1002_v9, %v1002_v9 }
   0xc   :  { %837 = vmatpush1.bf16.msra.mxu0 %v1005_v10  ;;  %v224_v50 = vld [vmem:[%s1268_s3 + $0x48] sm:$0xff]  ;;  %v866_v52 = vpack.c.bf16 %v221_v49, %v219_v48  ;;  %v223_v54 = vld [vmem:[%s1268_s3 + $0x40] sm:$0xff]  ;;  %v225_v55 = vld [vmem:[%s1268_s3 + $0x50] sm:$0xff] }
   0xd   :  { %838 = vmatprep.subr.bf16.mxu0 %v929_v0  ;;  %v868_v53 = vpack.c.bf16 %v226_v51, %v224_v50  ;;  %v870_v56 = vpack.c.bf16 %v225_v55, %v223_v54  ;;  %v228_v57 = vld [vmem:[%s1268_s3 + $0x68] sm:$0xff]  ;;  %v227_v58 = vld [vmem:[%s1268_s3 + $0x60] sm:$0xff]  ;;  %s931_s3 = smov 56  }
   0xe   :  { %v27_v41 = vld [vmem:[%s1269_s0 + $0x8] sm:$0xff] }
  0x10   :  { %840 = vmatpush1.bf16.msra.mxu0 %v1017_v13 }
  0x11   :  { %841 = vmatprep.subr.bf16.mxu0 %v929_v0 }
  0x14   :  { %843 = vmatpush1.bf16.msra.mxu0 %v1027_v16 }
  0x15   :  { %844 = vmatprep.subr.bf16.mxu0 %v929_v0 }
  0x18   :  { %846 = vmatpush1.bf16.msra.mxu0 %v1037_v19 }
  0x19   :  { %847 = vmatprep.subr.bf16.mxu0 %v929_v0 }
  0x1c   :  { %849 = vmatpush1.bf16.msra.mxu0 %v1047_v22 }
  0x1d   :  { %850 = vmatprep.subr.bf16.mxu0 %v929_v0 }
  0x20   :  { %852 = vmatpush1.bf16.msra.mxu0 %v1057_v25 }
  0x21   :  { %853 = vmatprep.subr.bf16.mxu0 %v929_v0 }
  0x24   :  { %855 = vmatpush1.bf16.msra.mxu0 %v1067_v28 }
  0x25   :  { %899 = vmatprep.subr.bf16.mxu0 %v929_v0 }
  0x27   :  { %122 = vmatmul.mubr.f32.vlgmr.msra.gmra.mrb[0].mxu0 %v1074_v29 }
  0x28   :  { %744 = vmatprep.mubr.msk.f32.mxu0 %vm50_vm0, %v1079_v30 }
  0x2b   :  { %127 = vmatmul.mubr.f32.gmra.mrb[2].mxu0 %v1088_v31 }
  0x2c   :  { %791 = vmatprep.mubr.msk.f32.mxu0 %vm933_vm9, %v930_v59 }
  0xfa   :  { %v123_v33 = vpop.f32.mrb[0].mxu0 }
  0xfb   :  { %v125_v34 = vpop.f32.mrb[1].mxu0 }
  0xfc   :  { %v26_v34 = vld [vmem:[%s1269_s0] sm:$0xff] }
  0xfe   :  { %v128_v37 = vpop.f32.mrb[2].mxu0 }
  0xff   :  { %v856_v38 = vpack.c.bf16 %v128_v37, %v123_v33  ;;  %v130_v39 = vpop.f32.mrb[3].mxu0 }
 0x101   :  { %857 = vmatprep.subr.bf16.mxu1 %v856_v38 }
 0x102   :  { %859 = vmatpush3.bf16.msra.mxu1 %v856_v38 }
 0x103   :  { %861 = vmatprep.subr.bf16.mxu1 %v860_v40  ;;  %v475_v40 = vmul.f32 %v1074_v29, %v1074_v29 }
 0x105   :  { %785 = vmatmul.mubr.msk.f32.vlgmr.msra.gmra.mrb[0].mxu1 %vm50_vm0, %v133_v45  ;;  %v477_v45 = vmul.f32 %v1088_v31, %v1088_v31 }
 0x106   :  { %863 = vmatpush1.bf16.msra.mxu1 %v862_v46  ;;  %300 = vmatprep.mubr.f32.mxu1 %v930_v59  ;;  %v478_v46 = vmul.f32 %v1079_v30, %v1079_v30 }
 0x107   :  { %865 = vmatprep.subr.bf16.mxu1 %v864_v47 }
 0x10a   :  { %867 = vmatpush1.bf16.msra.mxu1 %v866_v52 }
 0x10b   :  { %869 = vmatprep.subr.bf16.mxu1 %v868_v53 }
 0x10e   :  { %871 = vmatpush1.bf16.msra.mxu1 %v870_v56 }
 0x10f   :  { %248 = vmatprep.subr.mxu1 %v228_v57 }
 0x112   :  { %249 = vmatpush1.msra.mxu1 %v227_v58 }
 0x113   :  { %872 = vmatprep.subr.bf16.mxu1 %v929_v0 }
 0x1d8   :  { %v786_v60 = vpop.f32.mrb[0].mxu1 }
 0x1d9   :  { %v206_v61 = vpop.f32.mrb[1].mxu1 }
 0x1da   :  { %747 = vmatmul.mubr.msk.f32.vlgmr.msra.gmra.mrb[2].mxu1 %vm229_vm1, %v206_v61 }
 0x1db   :  { %306 = vmatprep.mubr.f32.mxu1 %v930_v59  ;;  %874 = vmatpush1.bf16.msra.mxu1 %v984_v4 }
 0x1dc   :  { %875 = vmatprep.subr.bf16.mxu1 %v929_v0 }
 0x1de   :  { %748 = vmatmul.mubr.msk.f32.gmra.mrb[4].mxu1 %vm229_vm1, %v786_v60 }
 0x1df   :  { %877 = vmatpush1.bf16.msra.mxu1 %v990_v6 }
 0x1e0   :  { %878 = vmatprep.subr.bf16.mxu1 %v929_v0 }
 0x1e3   :  { %880 = vmatpush1.bf16.msra.mxu1 %v1005_v10 }
 0x1e4   :  { %881 = vmatprep.subr.bf16.mxu1 %v929_v0 }
 0x1e7   :  { %883 = vmatpush1.bf16.msra.mxu1 %v1017_v13 }
 0x1e8   :  { %884 = vmatprep.subr.bf16.mxu1 %v929_v0 }
 0x1eb   :  { %886 = vmatpush1.bf16.msra.mxu1 %v1027_v16 }
 0x1ec   :  { %887 = vmatprep.subr.bf16.mxu1 %v929_v0 }
 0x1ef   :  { %889 = vmatpush1.bf16.msra.mxu1 %v1037_v19 }
 0x1f0   :  { %890 = vmatprep.subr.bf16.mxu1 %v929_v0 }
 0x1f3   :  { %892 = vmatpush1.bf16.msra.mxu1 %v1047_v22 }
 0x1f4   :  { %893 = vmatprep.subr.bf16.mxu1 %v929_v0 }
 0x1f7   :  { %895 = vmatpush1.bf16.msra.mxu1 %v1057_v25 }
 0x1f8   :  { %896 = vmatprep.subr.bf16.mxu1 %v929_v0 }
 0x1fb   :  { %898 = vmatpush1.bf16.msra.mxu1 %v1067_v28 }
 0x1fc   :  { %902 = vmatprep.subr.bf16.mxu1 %v929_v0 }
 0x2ad   :  { %v302_v62 = vpop.f32.mrb[2].mxu1 }
 0x2ae   :  { %v304_v63 = vpop.f32.mrb[3].mxu1  ;;  %v313_v1 = vmul.f32 %v302_v62, %v302_v62 }
 0x2af   :  { %v315_v3 = vmul.f32 %v304_v63, %v304_v63 }
 0x2b0   :  { %321 = vrot.lane.b32.xlu0 %v313_v1, %s931_s3 }
 0x2b1   :  { %v308_v2 = vpop.f32.mrb[4].mxu1 }
 0x2b2   :  { %v310_v4 = vpop.f32.mrb[5].mxu1  ;;  %v314_v5 = vmul.f32 %v308_v2, %v308_v2 }
 0x2b3   :  { %v316_v6 = vmul.f32 %v310_v4, %v310_v4 }
 0x2b4   :  { %323 = vrot.lane.b32.xlu0 %v315_v3, %s931_s3  ;;  %325 = vrot.lane.b32.xlu1 %v314_v5, %s931_s3 }
 0x2b8   :  { %327 = vrot.lane.b32.xlu1 %v316_v6, %s931_s3 }
 0x322   :  { %v322_v7 = vpop.permute.xlu0 %321 }
 0x326   :  { %v324_v8 = vpop.permute.xlu0 %323  ;;  %v326_v10 = vpop.permute.xlu1 %325 }
 0x327   :  { %v329_v11 = vsel %vm229_vm1, %v322_v7, %v324_v8 }
 0x328   :  { %v333_v12 = vadd.f32 %v329_v11, %v313_v1 }
 0x32a   :  { %vm335_vm2 = vcmp.gt.f32.partialorder %v333_v12, 1e-30  ;;  %v328_v13 = vpop.permute.xlu1 %327 }
 0x32b   :  { %v337_v14 = vsel %vm335_vm2, %v333_v12, 1.0  ;;  %v330_v15 = vsel %vm229_vm1, %v326_v10, %v328_v13 }
 0x32c   :  { %921 = vrsqrt.f32 %v337_v14  ;;  %v334_v16 = vadd.f32 %v330_v15, %v314_v5 }
 0x32e   :  { %vm336_vm3 = vcmp.gt.f32.partialorder %v334_v16, 1e-30 }
 0x32f   :  { %v338_v17 = vsel %vm336_vm3, %v334_v16, 1.0 }
 0x330   :  { %923 = vrsqrt.f32 %v338_v17 }
 0x336   :  { %v922_v18 = vpop.eup %921 }
 0x337   :  { %v341_v19 = vmul.f32 %v922_v18, %v302_v62  ;;  %347 = vrot.lane.b32.xlu0 %v922_v18, %s932_s1 }
 0x339   :  { %v343_v47 = vsel %vm335_vm2, %v341_v19, 1.0 }
 0x33a   :  { %v924_v20 = vpop.eup %923  ;;  %v375_v48 = vmul.f32 %v343_v47, %v26_v34 }
 0x33b   :  { %v342_v21 = vmul.f32 %v924_v20, %v308_v2  ;;  %349 = vrot.lane.b32.xlu1 %v924_v20, %s932_s1 }
 0x33d   :  { %v344_v49 = vsel %vm336_vm3, %v342_v21, 1.0 }
 0x33e   :  { %v376_v54 = vmul.f32 %v344_v49, %v27_v41 }
 0x3a9   :  { %v348_v22 = vpop.permute.xlu0 %347 }
 0x3aa   :  { %v353_v23 = vmul.f32 %v348_v22, %v302_v62  ;;  %v354_v24 = vmul.f32 %v348_v22, %v304_v63 }
 0x3ac   :  { %361 = vrot.lane.b32.xlu0 %v353_v23, %s931_s3  ;;  %363 = vrot.lane.b32.xlu1 %v354_v24, %s931_s3 }
 0x3ad   :  { %v350_v25 = vpop.permute.xlu1 %349 }
 0x3ae   :  { %v355_v26 = vmul.f32 %v350_v25, %v308_v2  ;;  %v356_v27 = vmul.f32 %v350_v25, %v310_v4 }
 0x3b0   :  { %367 = vrot.lane.b32.xlu1 %v356_v27, %s931_s3  ;;  %365 = vrot.lane.b32.xlu0 %v355_v26, %s931_s3 }
 0x41e   :  { %v362_v28 = vpop.permute.xlu0 %361  ;;  %v364_v32 = vpop.permute.xlu1 %363 }
 0x41f   :  { %v369_v33 = vsel %vm229_vm1, %v362_v28, %v364_v32  ;;  %v527_v32 = vld [vmem:[%s1270_s5] sm:$0xff] }
 0x420   :  { %v373_v35 = vsel %vm335_vm2, %v369_v33, 0.0  ;;  %v528_v33 = vld [vmem:[%s1270_s5 + $0x8] sm:$0xff] }
 0x421   :  { %v377_v36 = vmul.f32 %v373_v35, %v26_v34  ;;  %v530_v35 = vld [vmem:[%s1270_s5 + $0x18] sm:$0xff] }
 0x422   :  { %v366_v37 = vpop.permute.xlu0 %365  ;;  %v368_v38 = vpop.permute.xlu1 %367 }
 0x423   :  { %v370_v39 = vsel %vm229_vm1, %v366_v37, %v368_v38  ;;  %381 = vrot.lane.b32.xlu0 %v377_v36, %s932_s1  ;;  %v531_v36 = vld [vmem:[%s1270_s5 + $0x20] sm:$0xff]  ;;  %v532_v37 = vld [vmem:[%s1270_s5 + $0x28] sm:$0xff]  ;;  %v533_v38 = vld [vmem:[%s1270_s5 + $0x30] sm:$0xff] }
 0x424   :  { %v374_v42 = vsel %vm336_vm3, %v370_v39, 0.0 }
 0x425   :  { %v378_v43 = vmul.f32 %v374_v42, %v27_v41 }
 0x427   :  { %383 = vrot.lane.b32.xlu1 %v378_v43, %s932_s1  ;;  %483 = vrot.lane.b32.xlu0 %v475_v40, %s931_s3 }
 0x42b   :  { %485 = vrot.lane.b32.xlu1 %v476_v44, %s931_s3  ;;  %487 = vrot.lane.b32.xlu0 %v477_v45, %s931_s3 }
 0x42f   :  { %489 = vrot.lane.b32.xlu1 %v478_v46, %s931_s3 }
 0x495   :  { %v382_v50 = vpop.permute.xlu0 %381 }
 0x496   :  { %v388_v51 = vsel %vm387_vm4, %v375_v48, %v382_v50  ;;  %v391_v52 = vsub.f32 %v382_v50, %v1002_v9 }
 0x497   :  { %v390_v53 = vsub.f32 %v388_v51, %v1074_v29 }
 0x498   :  { %749 = vmatprep.mubr.msk.f32.mxu1 %vm50_vm0, %v391_v52 }
 0x499   :  { %v384_v55 = vpop.permute.xlu1 %383  ;;  %465 = vmatmul.mubr.f32.vlgmr.msra.gmra.mrb[6].mxu1 %v390_v53  ;;  %v484_v56 = vpop.permute.xlu0 %483 }
 0x49a   :  { %v389_v57 = vsel %vm387_vm4, %v376_v54, %v384_v55  ;;  %v393_v58 = vsub.f32 %v384_v55, %v1079_v30 }
 0x49b   :  { %v392_v60 = vsub.f32 %v389_v57, %v1088_v31 }
 0x49c   :  { %750 = vmatprep.mubr.msk.f32.mxu1 %vm50_vm0, %v393_v58 }
 0x49d   :  { %470 = vmatmul.mubr.f32.gmra.mrb[8].mxu1 %v392_v60  ;;  %v486_v61 = vpop.permute.xlu1 %485  ;;  %v488_v63 = vpop.permute.xlu0 %487 }
 0x49e   :  { %v491_v62 = vsel %vm229_vm1, %v484_v56, %v486_v61  ;;  %826 = vmatprep.mubr.msk.f32.mxu1 %vm933_vm9, %v930_v59 }
 0x49f   :  { %v495_v9 = vadd.f32 %v491_v62, %v475_v40 }
 0x4a1   :  { %925 = vrsqrt.f32 %v495_v9  ;;  %v490_v29 = vpop.permute.xlu1 %489  ;;  %vm499_vm5 = vcmp.eq.f32.partialorder %v495_v9, inf  ;;  %v502_v4 = vand.u32 2147483648, %v495_v9  ;;  %vm501_vm6 = vcmp.eq.f32.partialorder %v495_v9, 0.0 }
 0x4a2   :  { %v492_v1 = vsel %vm229_vm1, %v488_v63, %v490_v29  ;;  %v655_v63 = vld [vmem:[%s1271_s6] sm:$0xff] }
 0x4a3   :  { %v496_v2 = vadd.f32 %v492_v1, %v477_v45 }
 0x4a5   :  { %927 = vrsqrt.f32 %v496_v2  ;;  %vm506_vm7 = vcmp.eq.f32.partialorder %v496_v2, inf  ;;  %v509_v7 = vand.u32 2147483648, %v496_v2  ;;  %vm508_vm8 = vcmp.eq.f32.partialorder %v496_v2, 0.0 }
 0x4ab   :  { %v926_v3 = vpop.eup %925 }
 0x4ac   :  { %v498_v30 = vmul.f32 %v926_v3, %v495_v9 }
 0x4ae   :  { %v500_v31 = vsel %vm499_vm5, %v495_v9, %v498_v30 }
 0x4af   :  { %v928_v5 = vpop.eup %927  ;;  %v503_v6 = vsel %vm501_vm6, %v502_v4, %v500_v31 }
 0x4b0   :  { %v505_v8 = vmul.f32 %v928_v5, %v496_v2  ;;  %v513_v10 = vsub.f32 %v26_v34, %v503_v6  ;;  %v529_v34 = vld [vmem:[%s1270_s5 + $0x10] sm:$0xff] }
 0x4b2   :  { %v507_v11 = vsel %vm506_vm7, %v496_v2, %v505_v8  ;;  %v515_v14 = vmul.f32 0.022271771, %v513_v10 }
 0x4b3   :  { %v510_v12 = vsel %vm508_vm8, %v509_v7, %v507_v11 }
 0x4b4   :  { %v514_v13 = vsub.f32 %v27_v41, %v510_v12 }
 0x4b6   :  { %v516_v15 = vmul.f32 0.022271771, %v514_v13 }
 0x4b8   :  { %v916_v16 = vpack.i.bf16 %v516_v15, %v515_v14 }
 0x4ba   :  { %917 = vrot.lane.b32.xlu0 %v916_v16, %s931_s3 }
 0x52c   :  { %v918_v19 = vpop.permute.xlu0 %917 }
 0x52d   :  { %v920_v22 = vunpack.i.h.bf16 %v918_v19  ;;  %v919_v23 = vunpack.i.l.bf16 %v918_v19 }
 0x56c   :  { %v466_v17 = vpop.f32.mrb[6].mxu1 }
 0x56d   :  { %v468_v18 = vpop.f32.mrb[7].mxu1  ;;  %v511_v20 = vmul.f32 0.07985957, %v466_v17 }
 0x56f   :  { %v525_v26 = vsel %vm229_vm1, %v511_v20, %v919_v23 }
 0x570   :  { %v471_v21 = vpop.f32.mrb[8].mxu1 }
 0x571   :  { %v512_v24 = vmul.f32 0.07985957, %v471_v21  ;;  %v473_v25 = vpop.f32.mrb[9].mxu1 }
 0x573   :  { %v526_v27 = vsel %vm229_vm1, %v512_v24, %v920_v22 }
 0x574   :  { %v900_v28 = vpack.c.bf16 %v526_v27, %v525_v26 }
 0x576   :  { %901 = vmatpush3.bf16.msra.mxu0 %v900_v28 }
 0x579   :  { %792 = vmatmul.mubr.msk.f32.vlgmr.msra.gmra.mrb[4].mxu0 %vm50_vm0, %v527_v32 }
 0x57a   :  { %794 = vmatprep.mubr.msk.f32.mxu0 %vm933_vm9, %v930_v59 }
 0x57d   :  { %795 = vmatmul.mubr.msk.f32.gmra.mrb[6].mxu0 %vm50_vm0, %v528_v33 }
 0x57e   :  { %797 = vmatprep.mubr.msk.f32.mxu0 %vm933_vm9, %v930_v59 }
 0x581   :  { %798 = vmatmul.mubr.msk.f32.gmra.mrb[8].mxu0 %vm50_vm0, %v529_v34 }
 0x582   :  { %800 = vmatprep.mubr.msk.f32.mxu0 %vm933_vm9, %v930_v59 }
 0x585   :  { %801 = vmatmul.mubr.msk.f32.gmra.mrb[10].mxu0 %vm50_vm0, %v530_v35 }
 0x586   :  { %803 = vmatprep.mubr.msk.f32.mxu0 %vm933_vm9, %v930_v59 }
 0x589   :  { %804 = vmatmul.mubr.msk.f32.gmra.mrb[12].mxu0 %vm50_vm0, %v531_v36 }
 0x58a   :  { %806 = vmatprep.mubr.msk.f32.mxu0 %vm933_vm9, %v930_v59 }
 0x58d   :  { %807 = vmatmul.mubr.msk.f32.gmra.mrb[14].mxu0 %vm50_vm0, %v532_v37 }
 0x58e   :  { %809 = vmatprep.mubr.msk.f32.mxu0 %vm933_vm9, %v930_v59 }
 0x591   :  { %810 = vmatmul.mubr.msk.f32.gmra.mrb[16].mxu0 %vm50_vm0, %v533_v38 }
 0x64c   :  { %v621_v39 = vpop.f32.mrb[4].mxu0 }
 0x64d   :  { %v793_v40 = vpop.f32.mrb[5].mxu0  ;;  %v656_v42 = vmul.f32 %v621_v39, %v621_v39 }
 0x650   :  { %v626_v41 = vpop.f32.mrb[6].mxu0 }
 0x651   :  { %v657_v43 = vmul.f32 %v626_v41, %v626_v41  ;;  %v796_v44 = vpop.f32.mrb[7].mxu0 }
 0x653   :  { %v903_v45 = vpack.c.bf16 %v657_v43, %v656_v42 }
 0x654   :  { %v631_v46 = vpop.f32.mrb[8].mxu0 }
 0x655   :  { %904 = vmatpush3.bf16.msra.mxu1 %v903_v45  ;;  %v799_v47 = vpop.f32.mrb[9].mxu0  ;;  %v658_v49 = vmul.f32 %v631_v46, %v631_v46 }
 0x656   :  { %905 = vmatprep.subr.bf16.mxu1 %v929_v0 }
 0x658   :  { %v636_v48 = vpop.f32.mrb[10].mxu0 }
 0x659   :  { %v659_v50 = vmul.f32 %v636_v48, %v636_v48  ;;  %v802_v51 = vpop.f32.mrb[11].mxu0 }
 0x65b   :  { %v906_v52 = vpack.c.bf16 %v659_v50, %v658_v49 }
 0x65c   :  { %v641_v53 = vpop.f32.mrb[12].mxu0 }
 0x65d   :  { %907 = vmatpush3.bf16.msra.mxu1 %v906_v52  ;;  %v805_v54 = vpop.f32.mrb[13].mxu0  ;;  %v660_v56 = vmul.f32 %v641_v53, %v641_v53 }
 0x65e   :  { %908 = vmatprep.subr.bf16.mxu1 %v929_v0 }
 0x660   :  { %v646_v55 = vpop.f32.mrb[14].mxu0 }
 0x661   :  { %v661_v57 = vmul.f32 %v646_v55, %v646_v55  ;;  %v808_v58 = vpop.f32.mrb[15].mxu0 }
 0x663   :  { %v909_v60 = vpack.c.bf16 %v661_v57, %v660_v56 }
 0x664   :  { %v651_v61 = vpop.f32.mrb[16].mxu0 }
 0x665   :  { %910 = vmatpush3.bf16.msra.mxu1 %v909_v60  ;;  %v662_v62 = vmul.f32 %v651_v61, %v651_v61  ;;  %v811_v9 = vpop.f32.mrb[17].mxu0 }
 0x666   :  { %824 = vmatprep.subr.mxu1 %v930_v59 }
 0x669   :  { %825 = vmatpush3.msra.mxu1 %v662_v62 }
 0x66a   :  { %827 = vmatmul.mubr.msk.f32.vlgmr.msra.gmra.mrb[10].mxu1 %vm229_vm1, %v655_v63 }
 0x73d   :  { %v732_v29 = vpop.f32.mrb[10].mxu1 }
 0x73e   :  { %v828_v0 = vpop.f32.mrb[11].mxu1  ;;  %736 = vadd.xlane.f32.xlu1 %v732_v29 }
 0x7cb   :  { %v737_v1 = vpop.xlane.xlu1 %736 }
 0x7cc   :  { %738 = vst [vmem:[%s1272_s7] sm:$0xff] %v737_v1 }

</bundles_post_ra>
